<compile_context>
chip_gen: v7x
topology: tpu7x:2x2x1
jax: 0.10.0
libtpu: 0.0.40
codegen_flags: <defaults>
</compile_context>

<pallas_src>
import jax
import jax.numpy as jnp
from jax.experimental import pallas as pl
from jax.experimental.pallas import tpu as pltpu


def _round_up(x, m):
    return ((x + m - 1) // m) * m


def _pick_tile(n, unit, cap, step_penalty):
    """Tile size (multiple of `unit`, <= cap) balancing padding waste vs. #steps."""
    cap = max(cap, unit)
    best_t, best_cost = unit, None
    for t in range(unit, cap + 1, unit):
        padded = _round_up(n, t)
        steps = padded // t
        cost = padded + step_penalty * steps
        if best_cost is None or cost <= best_cost:
            best_t, best_cost = t, cost
    return best_t


def _gcn_kernel(a_ref, xs_ref, dinv_ref, o_ref):
    # a_ref:    (tm, tk)  int8  dense edge-count block (rows = target i, cols = source j)
    # xs_ref:   (tk, tf)  bf16  source features pre-scaled by deg_j^-1/2
    # dinv_ref: (tm, 1)   f32   deg_i^-1/2 for the target rows of this tile
    # o_ref:    (tm, tf)  f32   output block, doubles as the accumulator (resident over K)
    k = pl.program_id(2)

    @pl.when(k == 0)
    def _():
        o_ref[...] = jnp.zeros_like(o_ref)

    # int8 -> bf16 cast on the VPU (hidden under DMA), bf16 x bf16 -> f32 on the MXU.
    a_bf16 = a_ref[...].astype(jnp.bfloat16)
    o_ref[...] += jnp.dot(a_bf16, xs_ref[...], preferred_element_type=jnp.float32)

    @pl.when(k == pl.num_programs(2) - 1)
    def _():
        o_ref[...] = jnp.maximum(o_ref[...] * dinv_ref[...], 0.0)


def gcn_forward(x, edge_index, *, tm_cap=1024, tk_cap=2048, tf_cap=512):
    """x: (N, F) float32, edge_index: (2, E) int32 with row0=src(j), row1=dst(i)."""
    n, f = x.shape
    src = edge_index[0]
    dst = edge_index[1]

    # --- O(E) degree + normalization in the wrapper.
    deg = jnp.zeros((n,), jnp.float32).at[dst].add(1.0)
    dinv = jnp.where(deg > 0, jax.lax.rsqrt(deg), 0.0)
    # NOTE: PyTorch's deg.pow(-0.5) yields inf for zero-in-degree nodes; we map those
    # to 0 (they then contribute nothing).  Identical whenever every node has
    # in-degree >= 1, as in the test graph / typical GCN usage with self-loops.

    # --- Tile / padding choices.
    fp = _round_up(f, 128)                 # lane-dense feature width
    tf = min(tf_cap, fp)                   # feature tile (caps VMEM growth with F)
    tm = _pick_tile(n, 32, tm_cap, step_penalty=64)     # target-row tile (int8 sublane = 32)
    if _round_up(n, tm) // tm < 2 and n > 32:
        # v7x has 2 TensorCores: make sure the "parallel" row axis has >= 2 tiles.
        tm = min(tm, _round_up((n + 1) // 2, 32))
    tk = _pick_tile(n, 128, tk_cap, step_penalty=256)   # source / reduction tile
    nm = _round_up(n, tm)
    nk = _round_up(n, tk)

    # --- Densify the sparse graph directly into int8 with a single scatter:
    # A[i, j] = #edges j->i (exact for multiplicities <= 127), 1 byte/elem in HBM.
    a = jnp.zeros((nm, nk), jnp.int8).at[dst, src].add(jnp.int8(1))

    # --- Fold the source-side D^-1/2 into x, pad to (nk, fp), feed the MXU in bf16.
    xs = (dinv[:, None] * x.astype(jnp.float32)).astype(jnp.bfloat16)
    xs = jnp.zeros((nk, fp), jnp.bfloat16).at[:n, :f].set(xs)

    # --- Target-side D^-1/2, padded to (nm, 1), applied inside the kernel.
    dinv_t = jnp.zeros((nm, 1), jnp.float32).at[:n, 0].set(dinv)

    grid = (nm // tm, fp // tf, nk // tk)  # reduction (source/K) axis last

    # Double-buffered VMEM estimate (A int8 + xs bf16 + f32 output + dinv) + headroom.
    est_vmem = 2 * (tm * tk * 1 + tk * tf * 2 + tm * tf * 4 + tm * 4) + (1 << 20)
    vmem_limit = int(min(48 * 2**20, max(est_vmem, 16 * 2**20)))

    out = pl.pallas_call(
        _gcn_kernel,
        out_shape=jax.ShapeDtypeStruct((nm, fp), jnp.float32),
        grid_spec=pltpu.PrefetchScalarGridSpec(
            num_scalar_prefetch=0,
            grid=grid,
            in_specs=[
                pl.BlockSpec((tm, tk), lambda i, fi, k: (i, k)),   # A block (int8)
                pl.BlockSpec((tk, tf), lambda i, fi, k: (k, fi)),  # scaled x block (bf16)
                pl.BlockSpec((tm, 1), lambda i, fi, k: (i, 0)),    # target dinv
            ],
            out_specs=pl.BlockSpec((tm, tf), lambda i, fi, k: (i, fi)),
        ),
        compiler_params=pltpu.CompilerParams(
            dimension_semantics=("parallel", "parallel", "arbitrary"),
            vmem_limit_bytes=vmem_limit,
        ),
    )(a, xs, dinv_t)

    return out[:n, :f].astype(x.dtype)


def _reference(x, edge_index):
    # Pure-JAX reference mirroring the PyTorch code (scatter-based spmm), all in f32.
    n = x.shape[0]
    src = edge_index[0]
    dst = edge_index[1]
    deg = jnp.zeros((n,), x.dtype).at[dst].add(1.0)
    dinv = deg ** -0.5
    norm = dinv[src] * dinv[dst]
    msgs = norm[:, None] * x[src]
    out = jnp.zeros_like(x).at[dst].add(msgs)
    return jnp.maximum(out, 0.0)


if __name__ == "__main__":
    key = jax.random.PRNGKey(0)
    kx, ke = jax.random.split(key)

    N, F, E_RAND = 16, 32, 24
    x = jax.random.normal(kx, (N, F), dtype=jnp.float32)

    # Ring edges guarantee every node has in-degree >= 1 (no inf normalization),
    # plus some random extra edges.
    ring_src = jnp.arange(N, dtype=jnp.int32)
    ring_dst = (ring_src + 1) % N
    rand = jax.random.randint(ke, (2, E_RAND), 0, N, dtype=jnp.int32)
    edge_index = jnp.stack(
        [jnp.concatenate([ring_src, rand[0]]),
         jnp.concatenate([ring_dst, rand[1]])], axis=0)  # (2, E)

    out = gcn_forward(x, edge_index)
    jax.block_until_ready(out)

    ref = _reference(x, edge_index)
    assert out.shape == (N, F)
    # Tolerance accounts for the bf16 MXU path (xs rounded to bf16, f32 accumulate).
    assert jnp.allclose(out, ref, atol=2e-2, rtol=2e-2), float(jnp.max(jnp.abs(out - ref)))
    print("KERNEL_OK")
</pallas_src>

<mosaic_0001>
module attributes {stable_mosaic.version = 11 : i64} {
  func.func @_gcn_kernel(%arg0: i32, %arg1: i32, %arg2: i32, %arg3: memref<32x128xi8, #tpu.memory_space<vmem>>, %arg4: memref<128x128xbf16, #tpu.memory_space<vmem>>, %arg5: memref<32x1xf32, #tpu.memory_space<vmem>>, %arg6: memref<32x128xf32, #tpu.memory_space<vmem>>) attributes {dimension_semantics = [#tpu.dimension_semantics<parallel>, #tpu.dimension_semantics<parallel>, #tpu.dimension_semantics<arbitrary>], iteration_bounds = array<i64: 1, 1, 1>, scalar_prefetch = 0 : i64, scratch_operands = 0 : i64, tpu.core_type = #tpu.core_type<tc>, window_params = [{transform_indices = @transform_0, window_bounds = array<i64: 32, 128>}, {transform_indices = @transform_1, window_bounds = array<i64: 128, 128>}, {transform_indices = @transform_2, window_bounds = array<i64: 32, 1>}, {transform_indices = @transform_3, window_bounds = array<i64: 32, 128>}]} {
    %c0_i32 = arith.constant 0 : i32
    %0 = arith.cmpi eq, %arg2, %c0_i32 : i32
    %1 = arith.extui %0 : i1 to i32
    %c0_i32_0 = arith.constant 0 : i32
    %2 = arith.cmpi ne, %1, %c0_i32_0 : i32
    scf.if %2 {
      %cst_10 = arith.constant 0.000000e+00 : f32
      %13 = vector.broadcast %cst_10 : f32 to vector<32x128xf32>
      %c0_11 = arith.constant 0 : index
      %c0_12 = arith.constant 0 : index
      %14 = vector.load %arg6[%c0_11, %c0_12] : memref<32x128xf32, #tpu.memory_space<vmem>>, vector<32x128xf32>
      tpu.vector_store %arg6[%c0_11, %c0_12], %13 {strides = array<i32>} : memref<32x128xf32, #tpu.memory_space<vmem>>, vector<32x128xf32>,
    } else {
    }
    %c0 = arith.constant 0 : index
    %c0_1 = arith.constant 0 : index
    %3 = vector.load %arg3[%c0, %c0_1] : memref<32x128xi8, #tpu.memory_space<vmem>>, vector<32x128xi8>
    %4 = arith.sitofp %3 : vector<32x128xi8> to vector<32x128xbf16>
    %c0_2 = arith.constant 0 : index
    %c0_3 = arith.constant 0 : index
    %5 = vector.load %arg6[%c0_2, %c0_3] : memref<32x128xf32, #tpu.memory_space<vmem>>, vector<32x128xf32>
    %c0_4 = arith.constant 0 : index
    %c0_5 = arith.constant 0 : index
    %6 = vector.load %arg4[%c0_4, %c0_5] : memref<128x128xbf16, #tpu.memory_space<vmem>>, vector<128x128xbf16>
    %cst = arith.constant dense<0.000000e+00> : vector<32x128xf32>
    %7 = tpu.matmul %4, %6, %cst {dimension_numbers = #tpu.dot_dimension_numbers<[1], [0], [0], [1], [0, 0, 1, 1], [], []>} : vector<32x128xbf16>, vector<128x128xbf16>, vector<32x128xf32> -> vector<32x128xf32>
    %8 = arith.addf %5, %7 : vector<32x128xf32>
    %c0_6 = arith.constant 0 : index
    %c0_7 = arith.constant 0 : index
    %9 = vector.load %arg6[%c0_6, %c0_7] : memref<32x128xf32, #tpu.memory_space<vmem>>, vector<32x128xf32>
    tpu.vector_store %arg6[%c0_6, %c0_7], %8 {strides = array<i32>} : memref<32x128xf32, #tpu.memory_space<vmem>>, vector<32x128xf32>,
    %c0_i32_8 = arith.constant 0 : i32
    %10 = arith.cmpi eq, %arg2, %c0_i32_8 : i32
    %11 = arith.extui %10 : i1 to i32
    %c0_i32_9 = arith.constant 0 : i32
    %12 = arith.cmpi ne, %11, %c0_i32_9 : i32
    scf.if %12 {
      %c0_10 = arith.constant 0 : index
      %c0_11 = arith.constant 0 : index
      %13 = vector.load %arg6[%c0_10, %c0_11] : memref<32x128xf32, #tpu.memory_space<vmem>>, vector<32x128xf32>
      %c0_12 = arith.constant 0 : index
      %c0_13 = arith.constant 0 : index
      %14 = vector.load %arg5[%c0_12, %c0_13] : memref<32x1xf32, #tpu.memory_space<vmem>>, vector<32x1xf32>
      %15 = vector.broadcast %14 : vector<32x1xf32> to vector<32x128xf32>
      %16 = arith.mulf %13, %15 : vector<32x128xf32>
      %cst_14 = arith.constant 0.000000e+00 : f32
      %17 = vector.broadcast %cst_14 : f32 to vector<32x128xf32>
      %18 = arith.maximumf %16, %17 : vector<32x128xf32>
      %c0_15 = arith.constant 0 : index
      %c0_16 = arith.constant 0 : index
      %19 = vector.load %arg6[%c0_15, %c0_16] : memref<32x128xf32, #tpu.memory_space<vmem>>, vector<32x128xf32>
      tpu.vector_store %arg6[%c0_15, %c0_16], %18 {strides = array<i32>} : memref<32x128xf32, #tpu.memory_space<vmem>>, vector<32x128xf32>,
    } else {
    }
    return
  }
  func.func @transform_0(%arg0: i32, %arg1: i32, %arg2: i32) -> (i32, i32) {
    %c0_i32 = arith.constant 0 : i32
    return %arg0, %arg2 : i32, i32
  }
  func.func @transform_1(%arg0: i32, %arg1: i32, %arg2: i32) -> (i32, i32) {
    %c0_i32 = arith.constant 0 : i32
    return %arg2, %arg1 : i32, i32
  }
  func.func @transform_2(%arg0: i32, %arg1: i32, %arg2: i32) -> (i32, i32) {
    %c0_i32 = arith.constant 0 : i32
    %c0_i32_0 = arith.constant 0 : i32
    return %arg0, %c0_i32 : i32, i32
  }
  func.func @transform_3(%arg0: i32, %arg1: i32, %arg2: i32) -> (i32, i32) {
    %c0_i32 = arith.constant 0 : i32
    return %arg0, %arg1 : i32, i32
  }
}

</mosaic_0001>

<bundles_post_ra>
// kernel: tpu_custom_call.1
= control target key start
LH: loop header
LB: loop body
LE: loop exit
PB: predicated region body
PF: predicated region fallthrough
CT: control target
= control target key end

     0   :  { %8 = vsyncpa [#allocation3], 0  ;;  %s396_s0 = inlined_call_operand.vmem [shape: s8[32,128], index: 0, kind: input, shape index: {}]   ;;  %s397_s1 = inlined_call_operand.hbm [shape: bf16[128,128], index: 1, kind: input, shape index: {}]   ;;  %s398_s2 = inlined_call_operand.vmem [shape: f32[32,1], index: 2, kind: input, shape index: {}]   ;;  %s399_s3 = inlined_call_operand.hbm [shape: f32[32,128], index: 3, kind: output, shape index: {}]  }
   0x1   :  { %9 = vsyncpa [#allocation4], 0  ;;  %s330_s12 = smov [#allocation2]   ;;  %s282_s16 = scalar_lea.hbm %s397_s1, 1024 }
   0x2   :  { %s17_s13 = sshll.u32 %s330_s12, 4  ;;  %p283_p0 = scmp.ne.s32.totalorder %s397_s1, %s282_s16  ;;  %s18_s13 = int_to_ptr.vmem [resolvable:$true] %s17_s13 }
   0x3   :  { %p286_p1 = scmp.lt.u32.totalorder %s282_s16, %s397_s1 }
   0x5   :  { %p288_p2 = pnand %p286_p1, %p283_p0 }
   0x7   :  { %291 = shalt.err (!%p288_p2)
}
   0x8   :  { %s292_s21 = scalar_lea.vmem %s18_s13, 1024  ;;  %p297_p4 = scmp.lt.s32.totalorder %s18_s13, %s18_s13 }
   0x9   :  { %p293_p3 = scmp.ne.s32.totalorder %s18_s13, %s292_s21  ;;  %p298_p5 = scmp.lt.s32.totalorder %s292_s21, %s292_s21 }
   0xb   :  { %p299_p6 = por %p298_p5, %p297_p4 }
   0xd   :  { %p300_p7 = pnand %p299_p6, %p293_p3 }
   0xf   :  { %303 = shalt.err (!%p300_p7)
}
  0x10   :  { %s331_s22 = smov 64   ;;  %s332_s23 = smov 4  }
  0x11   :  { %23 = dma.hbm_to_vmem [thread:$0]  %s397_s1, 1024, %s18_s13, [#allocation3], %s331_s22, %s331_s22, %s332_s23  }
  0x12   :  { %326 = dma.done.wait [#allocation3], 1024  }
  0x13   :  { %327 = vsyncadd [#allocation3], 4294966272  ;;  %v333_v0 = vmov 0   ;;  %v274_v1 = vld [vmem:[#allocation2] sm:$0xff]   ;;  %v275_v2 = vld [vmem:[#allocation2 + $0x8] sm:$0xff]  }
  0x14   :  { %273 = vset.pattern.permute.xlu1 %v333_v0  ;;  %272 = vset.pattern.permute.xlu0 %v333_v0  ;;  %v276_v3 = vld [vmem:[#allocation2 + $0x10] sm:$0xff]   ;;  %v277_v4 = vld [vmem:[#allocation2 + $0x18] sm:$0xff]   ;;  %v38_v5 = vld [vmem:[%s396_s0] sm:$0xff]  ;;  %s334_s0 = smov [#allocation5]  }
  0x15   :  { %244 = vmatprep.subr.bf16.mxu0 %v274_v1  ;;  %v175_v6 = vld [vmem:[%s398_s2 + $0x10] sm:$0xff]  ;;  %v173_v7 = vld [vmem:[%s398_s2] sm:$0xff]  ;;  %v39_v8 = vunpack.c.l.s8.bf16 %v38_v5  ;;  %v176_v9 = vld [vmem:[%s398_s2 + $0x18] sm:$0xff]  ;;  %v40_v15 = vunpack.c.h.s8.bf16 %v38_v5 }
  0x16   :  { %245 = vmatpush3.bf16.msra.mxu0 %v274_v1  ;;  %189 = vperm.xlu1 %273, %v175_v6   ;;  %v174_v10 = vld [vmem:[%s398_s2 + $0x8] sm:$0xff]  ;;  %v278_v11 = vld [vmem:[#allocation2 + $0x20] sm:$0xff]   ;;  %v280_v13 = vld [vmem:[#allocation2 + $0x30] sm:$0xff]   ;;  %s214_s2 = sshll.u32 %s334_s0, 4  ;;  %s215_s2 = int_to_ptr.vmem [resolvable:$true] %s214_s2 }
  0x17   :  { %246 = vmatprep.subr.bf16.mxu0 %v275_v2  ;;  %179 = vperm.xlu0 %272, %v173_v7   ;;  %v279_v12 = vld [vmem:[#allocation2 + $0x28] sm:$0xff]   ;;  %v281_v14 = vld [vmem:[#allocation2 + $0x38] sm:$0xff]   ;;  %s304_s8 = scalar_lea.vmem %s215_s2, 512  ;;  %p309_p9 = scmp.lt.s32.totalorder %s215_s2, %s215_s2 }
  0x18   :  { %260 = vmatprep.mubr.bf16.mxu0 %v39_v8  ;;  %p305_p8 = scmp.ne.s32.totalorder %s215_s2, %s304_s8  ;;  %p310_p10 = scmp.lt.s32.totalorder %s304_s8, %s304_s8 }
  0x1a   :  { %247 = vmatpush3.bf16.msra.mxu0 %v275_v2  ;;  %194 = vperm.xlu1 %273, %v176_v9   ;;  %p311_p11 = por %p310_p10, %p309_p9 }
  0x1b   :  { %248 = vmatprep.subr.bf16.mxu0 %v276_v3  ;;  %184 = vperm.xlu0 %272, %v174_v10  }
  0x1c   :  { %p312_p12 = pnand %p311_p11, %p305_p8 }
  0x1e   :  { %249 = vmatpush3.bf16.msra.mxu0 %v276_v3 }
  0x1f   :  { %250 = vmatprep.subr.bf16.mxu0 %v277_v4 }
  0x22   :  { %251 = vmatpush3.bf16.msra.mxu0 %v277_v4 }
  0x23   :  { %252 = vmatprep.subr.bf16.mxu0 %v278_v11 }
  0x26   :  { %253 = vmatpush3.bf16.msra.mxu0 %v278_v11 }
  0x27   :  { %254 = vmatprep.subr.bf16.mxu0 %v279_v12 }
  0x2a   :  { %255 = vmatpush3.bf16.msra.mxu0 %v279_v12 }
  0x2b   :  { %256 = vmatprep.subr.bf16.mxu0 %v280_v13 }
  0x2e   :  { %257 = vmatpush3.bf16.msra.mxu0 %v280_v13 }
  0x2f   :  { %258 = vmatprep.subr.bf16.mxu0 %v281_v14 }
  0x32   :  { %259 = vmatpush3.bf16.msra.mxu0 %v281_v14 }
  0x35   :  { %261 = vmatmul.mubr.bf16.vlgmr.msra.gmra.mrb[0].mxu0 %v40_v15 }
  0x95   :  { %v190_v16 = vpop.permute.xlu1 %189 }
  0x96   :  { %v180_v17 = vpop.permute.xlu0 %179 }
  0x99   :  { %v195_v24 = vpop.permute.xlu1 %194 }
  0x9a   :  { %v185_v27 = vpop.permute.xlu0 %184 }
 0x108   :  { %v262_v18 = vpop.f32.mrb[0].mxu0 }
 0x109   :  { %v143_v19 = vpop.f32.mrb[1].mxu0  ;;  %v199_v22 = vmul.f32 %v262_v18, %v190_v16 }
 0x10a   :  { %v263_v20 = vpop.f32.mrb[2].mxu0  ;;  %v197_v23 = vmul.f32 %v180_v17, %v143_v19 }
 0x10b   :  { %v146_v21 = vpop.f32.mrb[3].mxu0  ;;  %v203_v25 = vmax.f32 %v199_v22, 0.0  ;;  %v200_v26 = vmul.f32 %v263_v20, %v195_v24 }
 0x10c   :  { %v201_v28 = vmax.f32 %v197_v23, 0.0  ;;  %v198_v29 = vmul.f32 %v185_v27, %v146_v21 }
 0x10d   :  { %207 = vst [vmem:[#allocation5 + $0x10] sm:$0xff] %v203_v25  ;;  %v204_v30 = vmax.f32 %v200_v26, 0.0 }
 0x10e   :  { %205 = vst [vmem:[#allocation5] sm:$0xff] %v201_v28  ;;  %v202_v31 = vmax.f32 %v198_v29, 0.0 }
 0x10f   :  { %208 = vst [vmem:[#allocation5 + $0x18] sm:$0xff] %v204_v30 }
 0x110   :  { %206 = vst [vmem:[#allocation5 + $0x8] sm:$0xff] %v202_v31 }
 0x111   :  { %315 = shalt.err (!%p312_p12)
}
 0x112   :  { %s316_s11 = scalar_lea.hbm %s399_s3, 512 }
 0x113   :  { %p317_p13 = scmp.ne.s32.totalorder %s399_s3, %s316_s11  ;;  %p320_p0 = scmp.lt.u32.totalorder %s316_s11, %s399_s3 }
 0x115   :  { %p322_p1 = pnand %p320_p0, %p317_p13 }
 0x117   :  { %325 = shalt.err (!%p322_p1)
}
 0x118   :  { %s335_s16 = smov 128   ;;  %s336_s17 = smov 8  }
 0x119   :  { %220 = dma.vmem_to_hbm [thread:$0]  %s215_s2, 512, %s399_s3, [#allocation4], %s335_s16, %s335_s16, %s336_s17  }
 0x11a   :  { %328 = dma.done.wait [#allocation4], 512  }
 0x11b   :  { %329 = vsyncadd [#allocation4], 4294966784 }
 0x11c   :  { %224 = vsyncpa [#allocation3], 1 }
 0x11d   :  { %225 = vsyncpa [#allocation4], 1 }

</bundles_post_ra>
